<compile_context>
chip_gen: v7x
topology: tpu7x:2x2x1
jax: 0.10.0
libtpu: 0.0.40
codegen_flags: <defaults>
</compile_context>

<pallas_src>
import jax
import jax.numpy as jnp
import numpy as np
from jax.experimental import pallas as pl
from jax.experimental.pallas import tpu as pltpu


def _round_up(a, b):
    return ((a + b - 1) // b) * b


def _choose_tp(s_pad, n_batch, target):
    """Largest spatial lane tile (multiple of 128) dividing s_pad with tile <= target,
    shrunk if needed so the grid has >= 4 steps (v7x has two TensorCores)."""
    m = s_pad // 128
    divisors = [d for d in range(1, m + 1) if m % d == 0]
    cand = [d for d in divisors if d * 128 <= target]
    d = max(cand) if cand else 1
    while n_batch * (m // d) < 4 and d > 1:
        smaller = [q for q in divisors if q < d]
        if not smaller:
            break
        d = max(smaller)
    return d * 128


# ----------------------------------------------------------------------------
# Pallas kernel: bf16 x bf16 -> f32 matmul on the MXU + bias add
# ----------------------------------------------------------------------------
def _dcn_kernel(w_ref, b_ref, col_ref, o_ref):
    # (C_out_pad, CK) @ (CK, TP) -> (C_out_pad, TP), f32 accumulation on the MXU
    out = jnp.dot(w_ref[...], col_ref[...], preferred_element_type=jnp.float32)
    o_ref[...] = (out + b_ref[...]).astype(o_ref.dtype)


# ----------------------------------------------------------------------------
# JAX glue: sampling positions, corner gathers; validity + mask + bilinear
# weights folded into the gather epilogue; ONE bf16 im2col slab out.
# ----------------------------------------------------------------------------
def _dcn_prepare(x, offsets, mask, kh, kw, stride, padding, dilation, dg):
    """Returns one slab of shape (N, C_in*K, H_out*W_out) in bf16:
       the fully-sampled, modulated im2col column (f32 accumulation, one bf16 cast)."""
    N, C_in, H, W = x.shape
    K = kh * kw
    H_out = (H + 2 * padding - dilation * (kh - 1) - 1) // stride + 1
    W_out = (W + 2 * padding - dilation * (kw - 1) - 1) // stride + 1
    S = H_out * W_out

    # DCNv2 channel layout: offsets (N, dg*K*2, Ho, Wo) with per-tap (y, x);
    # mask (N, dg*K, Ho, Wo)
    off = offsets.reshape(N, dg, K, 2, H_out, W_out).astype(jnp.float32)
    off_y, off_x = off[:, :, :, 0], off[:, :, :, 1]
    msk = mask.reshape(N, dg, K, H_out, W_out).astype(jnp.float32)

    ky = jnp.repeat(jnp.arange(kh), kw).astype(jnp.float32)   # (K,)
    kx = jnp.tile(jnp.arange(kw), kh).astype(jnp.float32)
    base_y = (jnp.arange(H_out) * stride - padding).astype(jnp.float32)
    base_x = (jnp.arange(W_out) * stride - padding).astype(jnp.float32)

    p_y = base_y[None, None, None, :, None] + (ky * dilation)[None, None, :, None, None] + off_y
    p_x = base_x[None, None, None, None, :] + (kx * dilation)[None, None, :, None, None] + off_x

    y0 = jnp.floor(p_y)
    x0 = jnp.floor(p_x)
    ly = p_y - y0
    lx = p_x - x0
    hy = 1.0 - ly
    hx = 1.0 - lx
    y0i = y0.astype(jnp.int32)
    x0i = x0.astype(jnp.int32)
    y1i = y0i + 1
    x1i = x0i + 1

    vy0 = ((y0i >= 0) & (y0i < H)).astype(jnp.float32)
    vy1 = ((y1i >= 0) & (y1i < H)).astype(jnp.float32)
    vx0 = ((x0i >= 0) & (x0i < W)).astype(jnp.float32)
    vx1 = ((x1i >= 0) & (x1i < W)).astype(jnp.float32)

    y0c = jnp.clip(y0i, 0, H - 1)
    y1c = jnp.clip(y1i, 0, H - 1)
    x0c = jnp.clip(x0i, 0, W - 1)
    x1c = jnp.clip(x1i, 0, W - 1)

    # per-corner scale = bilinear weight * validity * modulation mask
    s00 = hy * hx * vy0 * vx0 * msk
    s01 = hy * lx * vy0 * vx1 * msk
    s10 = ly * hx * vy1 * vx0 * msk
    s11 = ly * lx * vy1 * vx1 * msk

    cpg = C_in // dg

    def expand(a):                          # (N, dg, ...) -> (N, C_in, ...)
        return a if cpg == 1 else jnp.repeat(a, cpg, axis=1)

    x_flat = x.reshape(N, C_in, H * W).astype(jnp.float32)

    def corner(idx, scale):
        idx_c = expand(idx).reshape(N, C_in, K * S)
        g = jnp.take_along_axis(x_flat, idx_c, axis=2).reshape(N, C_in, K, H_out, W_out)
        return g * expand(scale)

    # f32 accumulation of the four weighted corners, single bf16 rounding
    col = (corner(y0c * W + x0c, s00)
           + corner(y0c * W + x1c, s01)
           + corner(y1c * W + x0c, s10)
           + corner(y1c * W + x1c, s11))
    col = col.astype(jnp.bfloat16).reshape(N, C_in * K, S)
    return col, H_out, W_out


# ----------------------------------------------------------------------------
# Wrapper: (N, CK, S) slab, batch as squeezed grid axis, large lane tiles
# ----------------------------------------------------------------------------
def modulated_deform_conv2d(x, offsets, mask, weight, bias, *,
                            stride=1, padding=0, dilation=1, deformable_groups=1):
    N, C_in, H, W = x.shape
    C_out, C_in_w, kh, kw = weight.shape
    assert C_in_w == C_in, "conv groups == 1 expected"
    K = kh * kw
    CK = C_in * K

    col, H_out, W_out = _dcn_prepare(x, offsets, mask, kh, kw,
                                     stride, padding, dilation, deformable_groups)
    S = H_out * W_out

    # Padding-aware tile choice: pad S to a multiple of 128 only (<=127 cols waste),
    # then pick the largest lane tile dividing S_pad.  Target ~1-2 MB of slab bytes
    # per grid step, clamped to [512, 2048] lanes (keeps VMEM tiny even on v7x).
    S_pad = _round_up(S, 128)
    target_tp = min(2048, max(512, ((3 << 19) // (CK * 2)) // 128 * 128))
    TP = _choose_tp(S_pad, N, target_tp)
    if S_pad != S:
        # one extra pass over the single slab, only in the ragged case; padded
        # columns only feed output columns that are sliced off below.
        col = jnp.pad(col, ((0, 0), (0, 0), (0, S_pad - S)))

    # pad output-channel (sublane) dim to a multiple of 16 -> unmasked stores,
    # aligned bf16 weight rows; padded rows/bias are zero so they are inert.
    C_out_pad = _round_up(C_out, 16)
    w_mat = jnp.pad(weight.reshape(C_out, CK).astype(jnp.bfloat16),
                    ((0, C_out_pad - C_out), (0, 0)))
    b_col = jnp.pad(bias.astype(jnp.float32).reshape(C_out, 1),
                    ((0, C_out_pad - C_out), (0, 0)))

    out_dtype = x.dtype

    # double-buffered working set (bytes); stays far below every chip's VMEM
    working = (2 * CK * TP * 2                       # col slab (bf16, 2 buffers)
               + 2 * C_out_pad * TP * jnp.dtype(out_dtype).itemsize
               + C_out_pad * CK * 2 + C_out_pad * 4)
    assert working < 24 * 1024 * 1024, working

    out3d = pl.pallas_call(
        _dcn_kernel,
        out_shape=jax.ShapeDtypeStruct((N, C_out_pad, S_pad), out_dtype),
        grid_spec=pltpu.PrefetchScalarGridSpec(
            num_scalar_prefetch=0,
            grid=(N, S_pad // TP),
            in_specs=[pl.BlockSpec((C_out_pad, CK), lambda n, i: (0, 0)),
                      pl.BlockSpec((C_out_pad, 1), lambda n, i: (0, 0)),
                      pl.BlockSpec((None, CK, TP), lambda n, i: (n, 0, i))],
            out_specs=pl.BlockSpec((None, C_out_pad, TP), lambda n, i: (n, 0, i)),
        ),
        compiler_params=pltpu.CompilerParams(
            dimension_semantics=("parallel", "parallel"),
            # above v5e's 16 MiB scoped default, within v7x's 64 MiB physical VMEM
            vmem_limit_bytes=32 * 1024 * 1024),
    )(w_mat, b_col, col)

    out = out3d[:, :C_out, :S].reshape(N, C_out, H_out, W_out)
    return out.astype(x.dtype)


# ----------------------------------------------------------------------------
# Independent pure-JAX f32 reference (does NOT share _dcn_prepare)
# ----------------------------------------------------------------------------
def _reference_dcn(x, offsets, mask, weight, bias, *,
                   stride, padding, dilation, deformable_groups):
    N, C_in, H, W = x.shape
    C_out, _, kh, kw = weight.shape
    K = kh * kw
    dg = deformable_groups
    cpg = C_in // dg
    H_out = (H + 2 * padding - dilation * (kh - 1) - 1) // stride + 1
    W_out = (W + 2 * padding - dilation * (kw - 1) - 1) // stride + 1

    off = offsets.reshape(N, dg, K, 2, H_out, W_out).astype(jnp.float32)
    msk = mask.reshape(N, dg, K, H_out, W_out).astype(jnp.float32)

    ky = jnp.repeat(jnp.arange(kh), kw).astype(jnp.float32)
    kx = jnp.tile(jnp.arange(kw), kh).astype(jnp.float32)
    base_y = (jnp.arange(H_out) * stride - padding).astype(jnp.float32)
    base_x = (jnp.arange(W_out) * stride - padding).astype(jnp.float32)
    py = base_y[None, None, None, :, None] + (ky * dilation)[None, None, :, None, None] + off[:, :, :, 0]
    px = base_x[None, None, None, None, :] + (kx * dilation)[None, None, :, None, None] + off[:, :, :, 1]

    def sample_group(img_g, py_g, px_g, m_g):
        # img_g: (cpg, H, W); py_g/px_g/m_g: (K, Ho, Wo)
        y0f = jnp.floor(py_g)
        x0f = jnp.floor(px_g)
        lyv = py_g - y0f
        lxv = px_g - x0f
        y0i = y0f.astype(jnp.int32)
        x0i = x0f.astype(jnp.int32)

        def corner(yi, xi, w):
            valid = ((yi >= 0) & (yi < H) & (xi >= 0) & (xi < W)).astype(jnp.float32)
            yc = jnp.clip(yi, 0, H - 1)
            xc = jnp.clip(xi, 0, W - 1)
            v = img_g[:, yc, xc]                      # (cpg, K, Ho, Wo)
            return v * (w * valid)[None]

        val = (corner(y0i,     x0i,     (1.0 - lyv) * (1.0 - lxv))
               + corner(y0i,     x0i + 1, (1.0 - lyv) * lxv)
               + corner(y0i + 1, x0i,     lyv * (1.0 - lxv))
               + corner(y0i + 1, x0i + 1, lyv * lxv))
        return val * m_g[None]                        # (cpg, K, Ho, Wo)

    x_g = x.reshape(N, dg, cpg, H, W).astype(jnp.float32)
    col = jax.vmap(jax.vmap(sample_group))(x_g, py, px, msk)   # (N, dg, cpg, K, Ho, Wo)
    col = col.reshape(N, C_in, K, H_out, W_out)
    w = weight.reshape(C_out, C_in, K).astype(jnp.float32)
    out = jnp.einsum('ock,nckhw->nohw', w, col) + bias.astype(jnp.float32)[None, :, None, None]
    return out


# ----------------------------------------------------------------------------
# DeformableCONV module equivalent
# ----------------------------------------------------------------------------
class DeformableCONV:
    def __init__(self, num_joints, k, dilation, key):
        self.num_joints = num_joints
        self.k = k
        self.dilation = dilation
        self.padding = int(k / 2) * dilation
        kkey, bkey = jax.random.split(key)
        fan_in = num_joints * k * k
        stdv = 1.0 / np.sqrt(fan_in)
        # deterministic parameter init (ModulatedDeformConv: uniform weight, bias)
        self.weight = jax.random.uniform(kkey, (num_joints, num_joints, k, k),
                                         jnp.float32, -stdv, stdv)
        self.bias = jax.random.uniform(bkey, (num_joints,), jnp.float32, -stdv, stdv)

    def __call__(self, x, offsets, mask):
        return modulated_deform_conv2d(
            x, offsets, mask, self.weight, self.bias,
            stride=1, padding=self.padding, dilation=self.dilation,
            deformable_groups=self.num_joints)


if __name__ == "__main__":
    key = jax.random.PRNGKey(0)
    k_mod, k_x, k_off, k_msk = jax.random.split(key, 4)

    num_joints = 4        # C_in = C_out = deformable_groups
    ksz = 3
    dilation = 1
    N, H, W = 2, 16, 16
    K = ksz * ksz

    model = DeformableCONV(num_joints, ksz, dilation, k_mod)

    x = jax.random.normal(k_x, (N, num_joints, H, W), jnp.float32)
    offsets = 2.0 * jax.random.normal(k_off, (N, num_joints * 2 * K, H, W), jnp.float32)
    mask = jax.random.uniform(k_msk, (N, num_joints * K, H, W), jnp.float32)  # in [0, 1]

    out = model(x, offsets, mask)
    out = jax.block_until_ready(out)

    ref = _reference_dcn(x, offsets, mask, model.weight, model.bias,
                         stride=1, padding=model.padding, dilation=dilation,
                         deformable_groups=num_joints)
    ref = jax.block_until_ready(ref)

    assert out.shape == (N, num_joints, H, W), out.shape
    # bf16 im2col slab + bf16 weight into the MXU (f32 accumulation) -> compare against
    # the f32 reference with a tolerance covering the bf16 roundings
    np.testing.assert_allclose(np.asarray(out), np.asarray(ref), rtol=2e-2, atol=3e-2)

    print("KERNEL_OK")
</pallas_src>

<mosaic_0001>
module attributes {stable_mosaic.version = 11 : i64} {
  func.func @_dcn_kernel(%arg0: i32, %arg1: i32, %arg2: memref<16x36xbf16, #tpu.memory_space<vmem>>, %arg3: memref<16x1xf32, #tpu.memory_space<vmem>>, %arg4: memref<1x36x128xbf16, #tpu.memory_space<vmem>>, %arg5: memref<1x16x128xf32, #tpu.memory_space<vmem>>) attributes {dimension_semantics = [#tpu.dimension_semantics<parallel>, #tpu.dimension_semantics<parallel>], iteration_bounds = array<i64: 2, 2>, scalar_prefetch = 0 : i64, scratch_operands = 0 : i64, tpu.core_type = #tpu.core_type<tc>, window_params = [{pipeline_mode = #tpu.pipeline_mode<synchronous>, transform_indices = @transform_0, window_bounds = array<i64: 16, 36>}, {pipeline_mode = #tpu.pipeline_mode<synchronous>, transform_indices = @transform_1, window_bounds = array<i64: 16, 1>}, {transform_indices = @transform_2, window_bounds = array<i64: 1, 36, 128>}, {transform_indices = @transform_3, window_bounds = array<i64: 1, 16, 128>}]} {
    %c0 = arith.constant 0 : index
    %c0_0 = arith.constant 0 : index
    %0 = vector.load %arg2[%c0, %c0_0] : memref<16x36xbf16, #tpu.memory_space<vmem>>, vector<16x36xbf16>
    %c0_1 = arith.constant 0 : index
    %c0_2 = arith.constant 0 : index
    %c0_3 = arith.constant 0 : index
    %1 = vector.load %arg4[%c0_1, %c0_2, %c0_3] : memref<1x36x128xbf16, #tpu.memory_space<vmem>>, vector<1x36x128xbf16>
    %2 = vector.shape_cast %1 : vector<1x36x128xbf16> to vector<36x128xbf16>
    %cst = arith.constant dense<0.000000e+00> : vector<16x128xf32>
    %3 = tpu.matmul %0, %2, %cst {dimension_numbers = #tpu.dot_dimension_numbers<[1], [0], [0], [1], [0, 0, 1, 1], [], []>} : vector<16x36xbf16>, vector<36x128xbf16>, vector<16x128xf32> -> vector<16x128xf32>
    %c0_4 = arith.constant 0 : index
    %c0_5 = arith.constant 0 : index
    %4 = vector.load %arg3[%c0_4, %c0_5] : memref<16x1xf32, #tpu.memory_space<vmem>>, vector<16x1xf32>
    %5 = vector.broadcast %4 : vector<16x1xf32> to vector<16x128xf32>
    %6 = arith.addf %3, %5 : vector<16x128xf32>
    %c0_6 = arith.constant 0 : index
    %c0_7 = arith.constant 0 : index
    %c0_8 = arith.constant 0 : index
    %7 = vector.load %arg5[%c0_6, %c0_7, %c0_8] : memref<1x16x128xf32, #tpu.memory_space<vmem>>, vector<1x16x128xf32>
    %8 = vector.shape_cast %7 : vector<1x16x128xf32> to vector<16x128xf32>
    %9 = vector.shape_cast %6 : vector<16x128xf32> to vector<1x16x128xf32>
    tpu.vector_store %arg5[%c0_6, %c0_7, %c0_8], %9 {strides = array<i32>} : memref<1x16x128xf32, #tpu.memory_space<vmem>>, vector<1x16x128xf32>,
    return
  }
  func.func @transform_0(%arg0: i32, %arg1: i32) -> (i32, i32) {
    %c0_i32 = arith.constant 0 : i32
    %c0_i32_0 = arith.constant 0 : i32
    %c0_i32_1 = arith.constant 0 : i32
    return %c0_i32, %c0_i32_0 : i32, i32
  }
  func.func @transform_1(%arg0: i32, %arg1: i32) -> (i32, i32) {
    %c0_i32 = arith.constant 0 : i32
    %c0_i32_0 = arith.constant 0 : i32
    %c0_i32_1 = arith.constant 0 : i32
    return %c0_i32, %c0_i32_0 : i32, i32
  }
  func.func @transform_2(%arg0: i32, %arg1: i32) -> (i32, i32, i32) {
    %c0_i32 = arith.constant 0 : i32
    %c0_i32_0 = arith.constant 0 : i32
    return %arg0, %c0_i32, %arg1 : i32, i32, i32
  }
  func.func @transform_3(%arg0: i32, %arg1: i32) -> (i32, i32, i32) {
    %c0_i32 = arith.constant 0 : i32
    %c0_i32_0 = arith.constant 0 : i32
    return %arg0, %c0_i32, %arg1 : i32, i32, i32
  }
}

</mosaic_0001>

<bundles_post_ra>
// kernel: tpu_custom_call.1
= control target key start
LH: loop header
LB: loop body
LE: loop exit
PB: predicated region body
PF: predicated region fallthrough
CT: control target
= control target key end

     0   :  { %8 = vsyncpa [#allocation4], 0  ;;  %s832_s0 = inlined_call_operand.vmem [shape: bf16[16,36], index: 0, kind: input, shape index: {}]   ;;  %s833_s1 = inlined_call_operand.vmem [shape: f32[16,1], index: 1, kind: input, shape index: {}]   ;;  %s834_s2 = inlined_call_operand.vmem [shape: bf16[2,36,256], index: 2, kind: input, shape index: {}]   ;;  %s835_s3 = inlined_call_operand.hbm [shape: f32[2,16,256], index: 3, kind: output, shape index: {}]  }
   0x1   :  { %10 = vsyncpa [#allocation4 + $0x1], 0  ;;  %s672_s12 = smov 0   ;;  %s674_s13 = smov 0  }
   0x2   :  { %s676_s14 = smov 0   ;;  %s678_s15 = smov 0  }
   0x3   :  { %s680_s16 = smov 0   ;;  %s682_s17 = smov 0  }
   0x4   :  { %s684_s18 = smov 0   ;;  %s686_s19 = smov 0  }
   0x5 LB: > { %s433_s20 = sadd.s32 4294967295, %s643_s19   ;;  %s434_s21 = sadd.s32 4294967294, %s643_s19   ;;  %s643_s19 = sphi %s686_s19, %s16_s19   ;;  %s639_s18 = sphi %s684_s18, %s845_s18   ;;  %s635_s17 = sphi %s682_s17, %s844_s17   ;;  %s631_s16 = sphi %s680_s16, %s843_s16   ;;  %s627_s15 = sphi %s678_s15, %s842_s15   ;;  %s623_s14 = sphi %s676_s14, %s841_s14   ;;  %s619_s13 = sphi %s674_s13, %s840_s13   ;;  %s615_s12 = sphi %s672_s12, %s839_s12  }
   0x6   : > { %s25_s22 = sadd.s32 1, %s635_s17  ;;  %s28_s23 = sadd.s32 1, %s639_s18 }
   0x7   : > { %p26_p0 = scmp.ge.s32.totalorder %s25_s22, 2  ;;  %p86_p1 = scmp.ne.s32.totalorder %s623_s14, %s619_s13 }
   0x8   : > { %p87_p2 = scmp.eq.s32.totalorder %s643_s19, 0  ;;  %p118_p5 = scmp.eq.s32.totalorder %s433_s20, 3 }
   0x9   : > { %s847_s22 = smov (%p26_p0, %s25_s22), 0  ;;  %s849_s23 = smov (!%p26_p0, %s28_s23), %s639_s18 }
   0xa   : > { %s75_s24 = ssub.s32 %s635_s17, %s847_s22  ;;  %p724_p3 = por %p87_p2, %p86_p1 }
   0xb   : > { %p30_p4 = scmp.ge.s32.totalorder %s849_s23, 2  ;;  %p123_p6 = scmp.ne.s32.totalorder %s619_s13, %s615_s12 }
   0xc   : > { %p124_p7 = scmp.eq.s32.totalorder %s434_s21, 3  ;;  %p732_p8 = por %p118_p5, %p86_p1 }
   0xd   : > { %s851_s23 = smov (%p30_p4, %s849_s23), 0  ;;  %s79_s30 = sadd.s32 1, %s623_s14 }
   0xe   : > { %p736_p9 = por %p124_p7, %p123_p6  ;;  %s74_s28 = ssub.s32 %s639_s18, %s851_s23 }
   0xf   : > { %s76_s29 = sor.u32 %s75_s24, %s74_s28  ;;  %p436_p11 = scmp.ge.s32.totalorder %s643_s19, 4 }
  0x10   : > { %p77_p10 = scmp.eq.s32.totalorder %s76_s29, 0 }
  0x11   : > { %146 = sbr.rel (%p436_p11) target bundleno = 34 (0x22), region = 24 }
  0x12   : > { %s744_s4 = scalar_select %p77_p10, %s623_s14, %s79_s30  }
  0x18   : > { %149 = sbr.rel (!%p724_p3) target bundleno = 34 (0x22), region = 28  ;;  %s151_s5 = sand.u32 (%p724_p3), 1, %s623_s14  }
  0x19   : > { %s465_s6 = smul.u32 (%p724_p3), 10, %s639_s18 }
  0x1a   : > { %s464_s7 = smul.u32 (%p724_p3), 20, %s151_s5 }
  0x1b   : > { %s155_s8 = sadd.s32 (%p724_p3), %s635_s17, %s465_s6 }
  0x1c   : > { %s437_s9 = sshll.u32 (%p724_p3), %s155_s8, 2  ;;  %s153_s21 = scalar_lea.vmem (%p724_p3), [#allocation2], %s464_s7 }
  0x1d   : > { %s157_s20 = scalar_lea.vmem (%p724_p3), %s834_s2, %s437_s9 }
  0x1e   : > { %v173_v0 = vld [vmem:[%s157_s20] sm:$0xf] (%p724_p3)  ;;  %v175_v1 = vld [vmem:[%s157_s20 + $0x8] sm:$0xf] (%p724_p3)  ;;  %v177_v2 = vld [vmem:[%s157_s20 + $0x10] sm:$0xf] (%p724_p3) }
  0x1f   : > { %174 = vst [vmem:[%s153_s21] sm:$0xf] %v173_v0  ;;  %176 = vst [vmem:[%s153_s21 + $0x4] sm:$0xf] %v175_v1  ;;  %v179_v3 = vld [vmem:[%s157_s20 + $0x18] sm:$0xf] }
  0x20   : > { %178 = vst [vmem:[%s153_s21 + $0x8] sm:$0xf] %v177_v2  ;;  %v181_v4 = vld [vmem:[%s157_s20 + $0x20] sm:$0xf]  ;;  %180 = vst [vmem:[%s153_s21 + $0xc] sm:$0xf] %v179_v3 }
  0x21   : > { %182 = vst [vmem:[%s153_s21 + $0x10] sm:$0xf] %v181_v4 }
  0x22 PF: > { %p438_p12 = scmp.ge.s32.totalorder %s643_s19, 1  ;;  %p214_p13 = scmp.lt.s32.totalorder %s643_s19, 5 }
  0x24   : > { %p215_p0 = pnand %p438_p12, %p214_p13 }
  0x25   : > { %s758_s24 = sand.u32 (!%p215_p0), 1, %s619_s13   ;;  %v645_v5 = vmov (!%p215_p0), 0.0   ;;  %vm646_vm0 = vmmov (!%p215_p0), 0   ;;  %v252_v6 = vld [vmem:[%s833_s1] sm:$0xff] (!%p215_p0)  ;;  %v647_v7 = vmov (!%p215_p0), 0   ;;  %v253_v9 = vld [vmem:[%s833_s1 + $0x8] sm:$0xff] (!%p215_p0) }
  0x26   : > { %218 = sbr.rel (%p215_p0) target bundleno = 286 (0x11e), region = 69  ;;  %454 = vmatprep.subr.bf16.mxu0 (!%p215_p0), %v645_v5  ;;  %460 = vmatprep.mubr.msk.bf16.mxu0 (!%p215_p0), %vm646_vm0, %v645_v5  ;;  %vm288_vm1 = vcmask (!%p215_p0), 1041408   ;;  %v548_v13 = vld [vmem:[%s832_s0] sm:$0xff] (!%p215_p0)   ;;  %vm284_vm2 = vcmask (!%p215_p0), 293888   ;;  %s439_s9 = sshll.u32 (!%p215_p0), %s758_s24, 4 }
  0x27   : > { %s466_s25 = smul.u32 (!%p215_p0), 20, %s758_s24  ;;  %544 = vset.pattern.permute.xlu0 (!%p215_p0), %v647_v7  ;;  %s446_s10 = sshll.u32 (!%p215_p0), %s631_s16, 2 }
  0x28   : > { %256 = vperm.xlu0 (!%p215_p0), %544, %v252_v6   ;;  %s347_s11 = sadd.s32 (!%p215_p0), %s627_s15, %s446_s10  ;;  %s243_s20 = scalar_lea.vmem (!%p215_p0), [#allocation3], %s439_s9 }
  0x29   : > { %s223_s30 = scalar_lea.vmem (!%p215_p0), [#allocation2], %s466_s25  ;;  %s350_s21 = sshll.u32 (!%p215_p0), %s243_s20, 4  ;;  %s773_s21 = int_to_ptr.vmem [resolvable:$true] %s350_s21 }
  0x2a   : > { %v545_v8 = vld [vmem:[%s223_s30] sm:$0xff] (!%p215_p0)   ;;  %v546_v10 = vld [vmem:[%s223_s30 + $0x8] sm:$0xff] (!%p215_p0)   ;;  %v547_v11 = vld [vmem:[%s223_s30 + $0x10] ss:$0 sps:$4 sm:$0x33] (!%p215_p0)   ;;  %s447_s25 = sshll.u32 (!%p215_p0), %s347_s11, 7 }
  0x2b   : > { %455 = vmatpush3.bf16.msra.mxu0 (!%p215_p0), %v545_v8  ;;  %v290_v12 = vsel (!%p215_p0), %vm288_vm1, %v547_v11, 0  ;;  %s778_s16 = scalar_lea.hbm (!%p215_p0), %s835_s3, %s447_s25  ;;  %s336_s15 = scalar_lea.sflag (!%p215_p0), [#allocation4], %s758_s24 }
  0x2c   : > { %456 = vmatprep.subr.bf16.mxu0 (!%p215_p0), %v645_v5  ;;  %261 = vperm.xlu0 (!%p215_p0), %544, %v253_v9   ;;  %s549_s30 = scalar_lea.vmem (!%p215_p0), %s773_s21, 256  ;;  %s648_s5 = smov (!%p215_p0), [#allocation3]  }
  0x2d   : > { %p550_p1 = scmp.ne.s32.totalorder %s773_s21, %s549_s30  ;;  %s553_s6 = sshll.u32 %s648_s5, 4  ;;  %s554_s6 = int_to_ptr.vmem [resolvable:$false] %s553_s6 }
  0x2e   : > { %s555_s7 = scalar_lea.vmem %s554_s6, 512  ;;  %p556_p4 = scmp.lt.s32.totalorder %s773_s21, %s554_s6 }
  0x2f   : > { %457 = vmatpush3.bf16.msra.mxu0 %v546_v10  ;;  %p551_p2 = pnand %p550_p1, %p732_p8  ;;  %p557_p5 = scmp.lt.s32.totalorder %s555_s7, %s549_s30 }
  0x30   : > { %458 = vmatprep.subr.bf16.mxu0 %v645_v5 }
  0x31   : > { %p552_p3 = pneg %p551_p2  ;;  %p558_p6 = por %p557_p5, %p556_p4 }
  0x33   : > { %459 = vmatpush3.bf16.msra.mxu0 %v290_v12  ;;  %p559_p7 = pnand %p558_p6, %p552_p3 }
  0x36   : > { %461 = vmatmul.mubr.msk.bf16.vlgmr.msra.gmra.mrb[0].mxu0 %vm284_vm2, %v548_v13 }
  0xa7   : > { %v257_v14 = vpop.permute.xlu0 %256 }
  0xab   : > { %v262_v18 = vpop.permute.xlu0 %261 }
 0x109   : > { %v326_v15 = vpop.f32.mrb[0].mxu0 }
 0x10a   : > { %v327_v16 = vadd.f32 %v326_v15, %v257_v14  ;;  %v462_v17 = vpop.f32.mrb[1].mxu0 }
 0x10b   : > { %v329_v19 = vpop.f32.mrb[2].mxu0 }
 0x10c   : > { %333 = vst [vmem:[%s243_s20] sm:$0xff] %v327_v16  ;;  %v330_v20 = vadd.f32 %v329_v19, %v262_v18  ;;  %v463_v21 = vpop.f32.mrb[3].mxu0 }
 0x10e   : > { %334 = vst [vmem:[%s243_s20 + $0x8] sm:$0xff] %v330_v20 }
 0x10f   : > { %562 = shalt.err (!%p559_p7)
}
 0x110   : > { %s563_s8 = scalar_lea.hbm %s778_s16, 256  ;;  %s567_s11 = scalar_lea.hbm %s835_s3, 1024 }
 0x111   : > { %p564_p10 = scmp.ne.s32.totalorder %s778_s16, %s563_s8  ;;  %p568_p13 = scmp.lt.u32.totalorder %s778_s16, %s835_s3 }
 0x112   : > { %p569_p0 = scmp.lt.u32.totalorder %s567_s11, %s563_s8  ;;  %p571_p2 = scmp.lt.u32.totalorder %s563_s8, %s778_s16 }
 0x113   : > { %p565_p11 = pnand %p564_p10, %p732_p8 }
 0x114   : > { %p570_p1 = por %p569_p0, %p568_p13 }
 0x115   : > { %p566_p12 = pneg %p565_p11 }
 0x116   : > { %p572_p3 = por %p571_p2, %p570_p1 }
 0x118   : > { %p573_p4 = pnand %p572_p3, %p566_p12 }
 0x11a   : > { %576 = shalt.err (!%p573_p4)
}
 0x11b   : > { %s649_s28 = smov 128   ;;  %s650_s29 = smov 256  }
 0x11c   : > { %s651_s30 = smov 8  }
 0x11d   : > { %467 = dma.vmem_to_hbm [thread:$0]  (%p732_p8), %s773_s21, 256, %s778_s16, %s336_s15, %s649_s28, %s650_s29, %s651_s30  }
 0x11e PF: > { %p473_p5 = scmp.ge.s32.totalorder %s643_s19, 2  ;;  %s365_s5 = sand.u32 1, %s615_s12  }
 0x11f   : > { %s366_s6 = scalar_lea.sflag [#allocation4], %s365_s5 }
 0x120   : > { %p470_p6 = pnand %p473_p5, %p736_p9 }
 0x122   : > { %610 = dma.done.wait (!%p470_p6), %s366_s6, 256  }
 0x123   : > { %612 = vsyncadd (!%p470_p6), %s366_s6, 4294967040  ;;  %s16_s19 = sadd.s32 1, %s643_s19   ;;  %s839_s12 = smov %s619_s13 }
 0x124   : > { %p13_p7 = scmp.ge.s32.totalorder %s16_s19, 6   ;;  %s840_s13 = smov %s623_s14 }
 0x125   : > { %s841_s14 = smov %s744_s4  ;;  %s842_s15 = smov %s635_s17 }
 0x126   : > { %s843_s16 = smov %s639_s18  ;;  %s844_s17 = smov %s847_s22 }
 0x127   : > { %s845_s18 = smov %s851_s23  ;;  %15 = sbr.rel (!%p13_p7) target bundleno = 5 (0x5), region = 113 }
 0x12e   :  { %371 = vsyncpa [#allocation4], 1 }
 0x12f   :  { %373 = vsyncpa [#allocation4 + $0x1], 1 }

</bundles_post_ra>
